<compile_context>
chip_gen: v5e
topology: v5e:2x2
jax: 0.10.0
libtpu: 0.0.40
codegen_flags: <defaults>
</compile_context>

<pallas_src>
import functools
import math

import jax
import jax.numpy as jnp
from jax.experimental import pallas as pl
from jax.experimental.pallas import tpu as pltpu


# ---------------------------------------------------------------------------
# Fused kernel: the entire MLP for one (tm, input_dim) slab of rows.
# ---------------------------------------------------------------------------
def _mlp_fused_kernel(*refs, n_layers):
    """refs = (x_ref, w_0..w_{L-1}, b_0..b_{L-1}, o_ref).

    Weights/biases are whole-array VMEM blocks (constant index_map across the
    grid), so they are loaded once and reused for every row tile.  The layer
    loop is a static Python loop; intermediates live in vregs/VMEM and are
    never written to HBM.
    """
    x_ref = refs[0]
    w_refs = refs[1:1 + n_layers]
    b_refs = refs[1 + n_layers:1 + 2 * n_layers]
    o_ref = refs[1 + 2 * n_layers]

    h = x_ref[...].astype(jnp.float32)
    for i in range(n_layers):
        a = h.astype(w_refs[i].dtype)                  # bf16 feed if requested
        h = jnp.dot(a, w_refs[i][...], preferred_element_type=jnp.float32)
        h = h + b_refs[i][...].astype(jnp.float32)     # (1, N) broadcasts
        if i < n_layers - 1:
            h = jnp.maximum(h, 0.0)
    o_ref[...] = h.astype(o_ref.dtype)


# ---------------------------------------------------------------------------
# Parameter prep (hoisted out of the forward path).
# ---------------------------------------------------------------------------
def prepare_params(weights, biases, compute_dtype=jnp.float32):
    """torch-layout weights (out,in) -> (in,out); biases -> (1,out).

    Done once per parameter set, so the forward pass pays no transpose / pad /
    reshape of parameters.
    """
    w_t = [jnp.asarray(w, compute_dtype).T for w in weights]
    b2 = [jnp.asarray(b, jnp.float32).reshape(1, -1) for b in biases]
    return list(w_t), list(b2)


# ---------------------------------------------------------------------------
# Forward: Linear -> ReLU -> ... -> Linear, one pallas_call.
# ---------------------------------------------------------------------------
def mlp_forward(x, params, *, tm=256, interpret=False):
    """x: (..., input_dim); params from prepare_params()."""
    weights_t, biases2 = params
    n_layers = len(weights_t)
    assert n_layers == len(biases2) and n_layers >= 1

    lead = x.shape[:-1]
    x2 = x.reshape(-1, x.shape[-1])
    M, K0 = x2.shape
    N_out = int(weights_t[-1].shape[1])

    # Row tiling: small M -> a single slab equal to the full array (no (8,128)
    # constraint when block == array); large M -> tm-aligned tiles so the
    # "parallel" M axis has >= 2 blocks (lets v7x shard across both TCs).
    if M <= tm:
        tm_eff = M
        Mp = M
        xp = x2
    else:
        tm_eff = tm                                   # multiple of 8 and 128
        Mp = int(pl.cdiv(M, tm_eff)) * tm_eff
        xp = jnp.pad(x2, ((0, Mp - M), (0, 0))) if Mp != M else x2
    grid = (Mp // tm_eff,)

    in_specs = [pl.BlockSpec((tm_eff, K0), lambda i: (i, 0))]
    for w in weights_t:
        in_specs.append(pl.BlockSpec(w.shape, lambda i: (0, 0)))   # resident
    for b in biases2:
        in_specs.append(pl.BlockSpec(b.shape, lambda i: (0, 0)))   # resident
    out_spec = pl.BlockSpec((tm_eff, N_out), lambda i: (i, 0))

    # VMEM budget: params + double-buffered x/out slabs + f32 intermediates.
    itm = jnp.dtype(x2.dtype).itemsize
    param_bytes = sum(int(w.size) * w.dtype.itemsize for w in weights_t)
    param_bytes += sum(int(b.size) * b.dtype.itemsize for b in biases2)
    widest = max([K0, N_out] + [int(w.shape[1]) for w in weights_t])
    act_bytes = tm_eff * (K0 + N_out) * itm
    interm_bytes = 2 * tm_eff * widest * 4
    vmem_bytes = int(2 * (param_bytes + act_bytes) + interm_bytes + (8 << 20))
    vmem_bytes = max(16 << 20, min(vmem_bytes, 48 << 20))   # v7x-safe cap
    # TODO(synk): if param_bytes approaches the VMEM budget (very wide hidden
    # layers), fall back to a per-layer K-tiled matmul instead of full fusion.

    kernel = functools.partial(_mlp_fused_kernel, n_layers=n_layers)
    out = pl.pallas_call(
        kernel,
        out_shape=jax.ShapeDtypeStruct((Mp, N_out), x.dtype),
        grid_spec=pltpu.PrefetchScalarGridSpec(
            num_scalar_prefetch=0,
            grid=grid,
            in_specs=in_specs,
            out_specs=out_spec,
        ),
        compiler_params=pltpu.CompilerParams(
            dimension_semantics=("parallel",),
            vmem_limit_bytes=vmem_bytes,
        ),
        interpret=interpret,
    )(xp, *weights_t, *biases2)

    if Mp != M:
        out = out[:M]
    return out.reshape(*lead, N_out)


# ---------------------------------------------------------------------------
# Parameter init (torch nn.Linear default) + pure-JAX reference.
# ---------------------------------------------------------------------------
def init_mlp_params(key, input_dim, hidden_dim, output_dim, num_layers,
                    dtype=jnp.float32):
    """torch nn.Linear-style init: U(-1/sqrt(fan_in), 1/sqrt(fan_in))."""
    dims_in = [input_dim] + [hidden_dim] * (num_layers - 1)
    dims_out = [hidden_dim] * (num_layers - 1) + [output_dim]
    weights, biases = [], []
    for n_in, n_out in zip(dims_in, dims_out):
        key, kw, kb = jax.random.split(key, 3)
        bound = 1.0 / math.sqrt(n_in)
        weights.append(
            jax.random.uniform(kw, (n_out, n_in), dtype, -bound, bound))
        biases.append(
            jax.random.uniform(kb, (n_out,), dtype, -bound, bound))
    return weights, biases


def mlp_ref(x, weights, biases):
    n = len(weights)
    y = x
    for i, (w, b) in enumerate(zip(weights, biases)):
        y = y @ w.T + b
        if i < n - 1:
            y = jnp.maximum(y, 0.0)
    return y


if __name__ == "__main__":
    # Small shapes consistent with the module: (batch, seq, input_dim) tokens
    # through a 3-layer MLP.
    batch, seq = 2, 8
    input_dim, hidden_dim, output_dim, num_layers = 32, 64, 16, 3

    key = jax.random.PRNGKey(0)
    key, kx = jax.random.split(key)
    x = jax.random.normal(kx, (batch, seq, input_dim), dtype=jnp.float32)

    weights, biases = init_mlp_params(
        key, input_dim, hidden_dim, output_dim, num_layers)
    params = prepare_params(weights, biases)          # one-time prep

    out = jax.block_until_ready(mlp_forward(x, params))
    assert out.shape == (batch, seq, output_dim), out.shape

    ref = mlp_ref(x, weights, biases)
    assert jnp.allclose(out, ref, atol=1e-4, rtol=1e-4), (
        float(jnp.max(jnp.abs(out - ref))))

    print("KERNEL_OK")
</pallas_src>

<mosaic_0001>
module attributes {stable_mosaic.version = 11 : i64} {
  func.func @_mlp_fused_kernel(%arg0: i32, %arg1: memref<16x32xf32, #tpu.memory_space<vmem>>, %arg2: memref<32x64xf32, #tpu.memory_space<vmem>>, %arg3: memref<64x64xf32, #tpu.memory_space<vmem>>, %arg4: memref<64x16xf32, #tpu.memory_space<vmem>>, %arg5: memref<1x64xf32, #tpu.memory_space<vmem>>, %arg6: memref<1x64xf32, #tpu.memory_space<vmem>>, %arg7: memref<1x16xf32, #tpu.memory_space<vmem>>, %arg8: memref<16x16xf32, #tpu.memory_space<vmem>>) attributes {dimension_semantics = [#tpu.dimension_semantics<parallel>], iteration_bounds = array<i64: 1>, scalar_prefetch = 0 : i64, scratch_operands = 0 : i64, tpu.core_type = #tpu.core_type<tc>, window_params = [{transform_indices = @transform_0, window_bounds = array<i64: 16, 32>}, {pipeline_mode = #tpu.pipeline_mode<synchronous>, transform_indices = @transform_1, window_bounds = array<i64: 32, 64>}, {pipeline_mode = #tpu.pipeline_mode<synchronous>, transform_indices = @transform_2, window_bounds = array<i64: 64, 64>}, {pipeline_mode = #tpu.pipeline_mode<synchronous>, transform_indices = @transform_3, window_bounds = array<i64: 64, 16>}, {pipeline_mode = #tpu.pipeline_mode<synchronous>, transform_indices = @transform_4, window_bounds = array<i64: 1, 64>}, {pipeline_mode = #tpu.pipeline_mode<synchronous>, transform_indices = @transform_5, window_bounds = array<i64: 1, 64>}, {pipeline_mode = #tpu.pipeline_mode<synchronous>, transform_indices = @transform_6, window_bounds = array<i64: 1, 16>}, {transform_indices = @transform_7, window_bounds = array<i64: 16, 16>}]} {
    %c0 = arith.constant 0 : index
    %c0_0 = arith.constant 0 : index
    %0 = vector.load %arg1[%c0, %c0_0] : memref<16x32xf32, #tpu.memory_space<vmem>>, vector<16x32xf32>
    %c0_1 = arith.constant 0 : index
    %c0_2 = arith.constant 0 : index
    %1 = vector.load %arg2[%c0_1, %c0_2] : memref<32x64xf32, #tpu.memory_space<vmem>>, vector<32x64xf32>
    %cst = arith.constant dense<0.000000e+00> : vector<16x64xf32>
    %2 = tpu.matmul %0, %1, %cst {dimension_numbers = #tpu.dot_dimension_numbers<[1], [0], [0], [1], [0, 0, 1, 1], [], []>} : vector<16x32xf32>, vector<32x64xf32>, vector<16x64xf32> -> vector<16x64xf32>
    %c0_3 = arith.constant 0 : index
    %c0_4 = arith.constant 0 : index
    %3 = vector.load %arg5[%c0_3, %c0_4] : memref<1x64xf32, #tpu.memory_space<vmem>>, vector<1x64xf32>
    %4 = vector.broadcast %3 : vector<1x64xf32> to vector<16x64xf32>
    %5 = arith.addf %2, %4 : vector<16x64xf32>
    %cst_5 = arith.constant 0.000000e+00 : f32
    %6 = vector.broadcast %cst_5 : f32 to vector<16x64xf32>
    %7 = arith.maximumf %5, %6 : vector<16x64xf32>
    %c0_6 = arith.constant 0 : index
    %c0_7 = arith.constant 0 : index
    %8 = vector.load %arg3[%c0_6, %c0_7] : memref<64x64xf32, #tpu.memory_space<vmem>>, vector<64x64xf32>
    %cst_8 = arith.constant dense<0.000000e+00> : vector<16x64xf32>
    %9 = tpu.matmul %7, %8, %cst_8 {dimension_numbers = #tpu.dot_dimension_numbers<[1], [0], [0], [1], [0, 0, 1, 1], [], []>} : vector<16x64xf32>, vector<64x64xf32>, vector<16x64xf32> -> vector<16x64xf32>
    %c0_9 = arith.constant 0 : index
    %c0_10 = arith.constant 0 : index
    %10 = vector.load %arg6[%c0_9, %c0_10] : memref<1x64xf32, #tpu.memory_space<vmem>>, vector<1x64xf32>
    %11 = vector.broadcast %10 : vector<1x64xf32> to vector<16x64xf32>
    %12 = arith.addf %9, %11 : vector<16x64xf32>
    %cst_11 = arith.constant 0.000000e+00 : f32
    %13 = vector.broadcast %cst_11 : f32 to vector<16x64xf32>
    %14 = arith.maximumf %12, %13 : vector<16x64xf32>
    %c0_12 = arith.constant 0 : index
    %c0_13 = arith.constant 0 : index
    %15 = vector.load %arg4[%c0_12, %c0_13] : memref<64x16xf32, #tpu.memory_space<vmem>>, vector<64x16xf32>
    %cst_14 = arith.constant dense<0.000000e+00> : vector<16x16xf32>
    %16 = tpu.matmul %14, %15, %cst_14 {dimension_numbers = #tpu.dot_dimension_numbers<[1], [0], [0], [1], [0, 0, 1, 1], [], []>} : vector<16x64xf32>, vector<64x16xf32>, vector<16x16xf32> -> vector<16x16xf32>
    %c0_15 = arith.constant 0 : index
    %c0_16 = arith.constant 0 : index
    %17 = vector.load %arg7[%c0_15, %c0_16] : memref<1x16xf32, #tpu.memory_space<vmem>>, vector<1x16xf32>
    %18 = vector.broadcast %17 : vector<1x16xf32> to vector<16x16xf32>
    %19 = arith.addf %16, %18 : vector<16x16xf32>
    %c0_17 = arith.constant 0 : index
    %c0_18 = arith.constant 0 : index
    %20 = vector.load %arg8[%c0_17, %c0_18] : memref<16x16xf32, #tpu.memory_space<vmem>>, vector<16x16xf32>
    tpu.vector_store %arg8[%c0_17, %c0_18], %19 {strides = array<i32>} : memref<16x16xf32, #tpu.memory_space<vmem>>, vector<16x16xf32>,
    return
  }
  func.func @transform_0(%arg0: i32) -> (i32, i32) {
    %c0_i32 = arith.constant 0 : i32
    %c0_i32_0 = arith.constant 0 : i32
    return %arg0, %c0_i32 : i32, i32
  }
  func.func @transform_1(%arg0: i32) -> (i32, i32) {
    %c0_i32 = arith.constant 0 : i32
    %c0_i32_0 = arith.constant 0 : i32
    %c0_i32_1 = arith.constant 0 : i32
    return %c0_i32, %c0_i32_0 : i32, i32
  }
  func.func @transform_2(%arg0: i32) -> (i32, i32) {
    %c0_i32 = arith.constant 0 : i32
    %c0_i32_0 = arith.constant 0 : i32
    %c0_i32_1 = arith.constant 0 : i32
    return %c0_i32, %c0_i32_0 : i32, i32
  }
  func.func @transform_3(%arg0: i32) -> (i32, i32) {
    %c0_i32 = arith.constant 0 : i32
    %c0_i32_0 = arith.constant 0 : i32
    %c0_i32_1 = arith.constant 0 : i32
    return %c0_i32, %c0_i32_0 : i32, i32
  }
  func.func @transform_4(%arg0: i32) -> (i32, i32) {
    %c0_i32 = arith.constant 0 : i32
    %c0_i32_0 = arith.constant 0 : i32
    %c0_i32_1 = arith.constant 0 : i32
    return %c0_i32, %c0_i32_0 : i32, i32
  }
  func.func @transform_5(%arg0: i32) -> (i32, i32) {
    %c0_i32 = arith.constant 0 : i32
    %c0_i32_0 = arith.constant 0 : i32
    %c0_i32_1 = arith.constant 0 : i32
    return %c0_i32, %c0_i32_0 : i32, i32
  }
  func.func @transform_6(%arg0: i32) -> (i32, i32) {
    %c0_i32 = arith.constant 0 : i32
    %c0_i32_0 = arith.constant 0 : i32
    %c0_i32_1 = arith.constant 0 : i32
    return %c0_i32, %c0_i32_0 : i32, i32
  }
  func.func @transform_7(%arg0: i32) -> (i32, i32) {
    %c0_i32 = arith.constant 0 : i32
    %c0_i32_0 = arith.constant 0 : i32
    return %arg0, %c0_i32 : i32, i32
  }
}

</mosaic_0001>

<bundles_post_ra>
// kernel: tpu_custom_call.1
= control target key start
LH: loop header
LB: loop body
LE: loop exit
PB: predicated region body
PF: predicated region fallthrough
CT: control target
= control target key end

     0   :  { %12 = vsyncpa [#allocation3], 0  ;;  %s388_s0 = inlined_call_operand.vmem [shape: f32[16,32], index: 0, kind: input, shape index: {}]   ;;  %s389_s1 = inlined_call_operand.hbm [shape: f32[32,64], index: 1, kind: input, shape index: {}]   ;;  %s390_s2 = inlined_call_operand.vmem [shape: f32[64,64], index: 2, kind: input, shape index: {}]   ;;  %s391_s3 = inlined_call_operand.vmem [shape: f32[64,16], index: 3, kind: input, shape index: {}]   ;;  %s392_s4 = inlined_call_operand.vmem [shape: f32[1,64], index: 4, kind: input, shape index: {}]   ;;  %s393_s5 = inlined_call_operand.vmem [shape: f32[1,64], index: 5, kind: input, shape index: {}]   ;;  %s394_s6 = inlined_call_operand.vmem [shape: f32[1,16], index: 6, kind: input, shape index: {}]   ;;  %s395_s7 = inlined_call_operand.hbm [shape: f32[16,16], index: 7, kind: output, shape index: {}]  }
   0x1   :  { %13 = vsyncpa [#allocation4], 0  ;;  %s20_s26 = sshll.u32 %s389_s1, 4  ;;  %s265_s27 = smov [#allocation2]   ;;  %s21_s26 = int_to_ptr.hbm [resolvable:$true] %s20_s26 }
   0x2   :  { %s22_s28 = sshll.u32 %s265_s27, 4  ;;  %s266_s29 = smov 128   ;;  %s23_s28 = int_to_ptr.vmem [resolvable:$true] %s22_s28 }
   0x3   :  { %s267_s30 = smov 8  }
   0x4   :  { %28 = dma.hbm_to_vmem [thread:$0]  %s21_s26, 512, %s23_s28, [#allocation3], %s266_s29, %s266_s29, %s267_s30  }
   0x5   :  { %261 = dma.done.wait [#allocation3], 512  }
   0x6   :  { %262 = vsyncadd [#allocation3], 4294966784  ;;  %v48_v0 = vld [vmem:[#allocation2 + $0x18] sm:$0xff]  ;;  %v47_v1 = vld [vmem:[#allocation2 + $0x10] sm:$0xff]  ;;  %vm53_vm0 = vcmask 261120   ;;  %vm97_vm1 = vcmask 523264  }
   0x7   :  { %72 = vmatpush.msra.mxu0 %v48_v0  ;;  %v46_v2 = vld [vmem:[#allocation2 + $0x8] sm:$0xff]  ;;  %v92_v3 = vld [vmem:[%s390_s2 + $0x38] sm:$0xff]  ;;  %v91_v4 = vld [vmem:[%s390_s2 + $0x30] sm:$0xff]  ;;  %vm170_vm2 = vcmask 130048   ;;  %s179_s26 = sshll.u32 %s395_s7, 4  ;;  %s180_s26 = int_to_ptr.hbm [resolvable:$true] %s179_s26 }
   0x8   :  { %v45_v5 = vld [vmem:[#allocation2] sm:$0xff]  ;;  %112 = vmatpush.msra.mxu1 %v92_v3  ;;  %v90_v6 = vld [vmem:[%s390_s2 + $0x28] sm:$0xff]  ;;  %198 = vmatpush.msra.mxu3 %v92_v3  ;;  %v88_v9 = vld [vmem:[%s390_s2 + $0x18] sm:$0xff] }
   0x9   :  { %73 = vmatpush.msra.mxu0 %v47_v1  ;;  %v43_v7 = vld [vmem:[%s388_s0] sm:$0xff]  ;;  %v44_v10 = vld [vmem:[%s388_s0 + $0x8] sm:$0xff]  ;;  %v87_v11 = vld [vmem:[%s390_s2 + $0x10] sm:$0xff] }
   0xa   :  { %113 = vmatpush.msra.mxu1 %v91_v4  ;;  %v89_v8 = vld [vmem:[%s390_s2 + $0x20] sm:$0xff]  ;;  %199 = vmatpush.msra.mxu3 %v91_v4  ;;  %v86_v12 = vld [vmem:[%s390_s2 + $0x8] sm:$0xff]  ;;  %v136_v14 = vld [vmem:[%s391_s3 + $0x38] sm:$0xff] }
   0xb   :  { %74 = vmatpush.msra.mxu0 %v46_v2  ;;  %v85_v13 = vld [vmem:[%s390_s2] sm:$0xff]  ;;  %v135_v15 = vld [vmem:[%s391_s3 + $0x30] sm:$0xff]  ;;  %155 = vmatpush.msra.mxu2 %v136_v14  ;;  %v134_v16 = vld [vmem:[%s391_s3 + $0x28] sm:$0xff] }
   0xc   :  { %114 = vmatpush.msra.mxu1 %v90_v6  ;;  %200 = vmatpush.msra.mxu3 %v90_v6  ;;  %v133_v17 = vld [vmem:[%s391_s3 + $0x20] sm:$0xff]  ;;  %v132_v18 = vld [vmem:[%s391_s3 + $0x18] sm:$0xff]  ;;  %v131_v26 = vld [vmem:[%s391_s3 + $0x10] sm:$0xff] }
   0xd   :  { %75 = vmatpush.msra.mxu0 %v45_v5  ;;  %156 = vmatpush.msra.mxu2 %v135_v15  ;;  %v210_v19 = vld [vmem:[%s392_s4] ss:$0 sm:$0xff]  ;;  %v130_v27 = vld [vmem:[%s391_s3 + $0x8] sm:$0xff] }
   0xe   :  { %192 = vmatmul.msk.f32.vlgmr.msra.gmra.mxu0 %vm53_vm0, %v43_v7  ;;  %115 = vmatpush.msra.mxu1 %v89_v8  ;;  %v129_v28 = vld [vmem:[%s391_s3] sm:$0xff]  ;;  %s268_s3 = smov [#allocation5]  }
   0xf   :  { %201 = vmatpush.msra.mxu3 %v89_v8  ;;  %157 = vmatpush.msra.mxu2 %v134_v16  ;;  %v211_v29 = vld [vmem:[%s393_s5] ss:$0 sm:$0xff]  ;;  %s177_s5 = sshll.u32 %s268_s3, 4  ;;  %s178_s5 = int_to_ptr.vmem [resolvable:$true] %s177_s5 }
  0x10   :  { %116 = vmatpush.msra.mxu1 %v88_v9  ;;  %v212_v36 = vld [vmem:[%s394_s6] ss:$0 sm:$0xff] }
  0x11   :  { %202 = vmatpush.msra.mxu3 %v88_v9  ;;  %158 = vmatpush.msra.mxu2 %v133_v17 }
  0x12   :  { %117 = vmatpush.msra.mxu1 %v87_v11 }
  0x13   :  { %203 = vmatpush.msra.mxu3 %v87_v11  ;;  %159 = vmatpush.msra.mxu2 %v132_v18 }
  0x14   :  { %118 = vmatpush.msra.mxu1 %v86_v12 }
  0x15   :  { %204 = vmatpush.msra.mxu3 %v86_v12  ;;  %160 = vmatpush.msra.mxu2 %v131_v26 }
  0x16   :  { %193 = vmatmul.msk.f32.gmra.mxu0 %vm53_vm0, %v44_v10  ;;  %119 = vmatpush.msra.mxu1 %v85_v13 }
  0x17   :  { %205 = vmatpush.msra.mxu3 %v85_v13  ;;  %161 = vmatpush.msra.mxu2 %v130_v27 }
  0x19   :  { %162 = vmatpush.msra.mxu2 %v129_v28 }
  0x8b   :  { %v77_v20 = vpop.f32.mrf.mxu0 }
  0x8c   :  { %v78_v21 = vadd.f32 %v210_v19, %v77_v20 }
  0x8e   :  { %v83_v22 = vmax.f32 %v78_v21, 0.0 }
  0x90   :  { %194 = vmatmul.msk.f32.vlgmr.msra.gmra.mxu1 %vm97_vm1, %v83_v22 }
  0x93   :  { %v80_v23 = vpop.f32.mrf.mxu0 }
  0x94   :  { %v81_v24 = vadd.f32 %v210_v19, %v80_v23 }
  0x96   :  { %v84_v25 = vmax.f32 %v81_v24, 0.0 }
  0x98   :  { %195 = vmatmul.msk.f32.vlgmr.msra.gmra.mxu3 %vm97_vm1, %v84_v25 }
 0x10d   :  { %v121_v30 = vpop.f32.mrf.mxu1 }
 0x10e   :  { %v122_v31 = vadd.f32 %v211_v29, %v121_v30 }
 0x110   :  { %v127_v32 = vmax.f32 %v122_v31, 0.0 }
 0x112   :  { %196 = vmatmul.msk.f32.vlgmr.msra.gmra.mxu2 %vm97_vm1, %v127_v32 }
 0x11b   :  { %v124_v33 = vpop.f32.mrf.mxu3 }
 0x11c   :  { %v125_v34 = vadd.f32 %v211_v29, %v124_v33 }
 0x11e   :  { %v128_v35 = vmax.f32 %v125_v34, 0.0 }
 0x120   :  { %197 = vmatmul.msk.f32.gmra.mxu2 %vm97_vm1, %v128_v35 }
 0x195   :  { %v164_v37 = vpop.f32.mrf.mxu2 }
 0x196   :  { %v165_v38 = vadd.f32 %v212_v36, %v164_v37 }
 0x198   :  { %171 = vst.msk [vmem:[#allocation5] sm:$0xff] %vm170_vm2, %v165_v38 }
 0x1a3   :  { %v167_v39 = vpop.f32.mrf.mxu2 }
 0x1a4   :  { %v168_v40 = vadd.f32 %v212_v36, %v167_v39 }
 0x1a6   :  { %172 = vst.msk [vmem:[#allocation5 + $0x8] sm:$0xff] %vm170_vm2, %v168_v40 }
 0x1a7   :  { %185 = dma.vmem_to_hbm [thread:$0]  %s178_s5, 256, %s180_s26, [#allocation4], %s266_s29, %s266_s29, %s267_s30  }
 0x1a8   :  { %263 = dma.done.wait [#allocation4], 256  }
 0x1a9   :  { %264 = vsyncadd [#allocation4], 4294967040 }
 0x1aa   :  { %190 = vsyncpa [#allocation3], 1 }
 0x1ab   :  { %191 = vsyncpa [#allocation4], 1 }

</bundles_post_ra>
